<compile_context>
chip_gen: v6e
topology: v6e:2x2x1
jax: 0.10.0
libtpu: 0.0.40
codegen_flags: <defaults>
</compile_context>

<pallas_src>
import functools

import jax
import jax.numpy as jnp
from jax.experimental import pallas as pl
from jax.experimental.pallas import tpu as pltpu

F32 = jnp.float32
BF16 = jnp.bfloat16

# Scoped-VMEM cap: enough for the largest working set (~20 MiB at DistilBERT
# scale with bf16 weights/activations), safe on v7x (64 MiB physical) and well
# above the 16/32 MiB defaults on v5e/v6e.
VMEM_LIMIT = 48 * 1024 * 1024

# K-tile used to stream the big (201*768, 256) head weights from HBM.
HEAD_TK = 4096


# ----------------------------------------------------------------------------
# tiling helpers: fixed aligned tile targets + zero-padding of the tiled axes.
# ----------------------------------------------------------------------------
def _tile(dim, target, align):
    """Return (tile, padded_dim).  Full-extent block if dim <= target."""
    if dim <= target:
        return dim, dim
    t = max(align, (target // align) * align)
    padded = ((dim + t - 1) // t) * t
    return t, padded


def _pad_axis(x, axis, to):
    pad = to - x.shape[axis]
    if pad == 0:
        return x
    widths = [(0, 0)] * x.ndim
    widths[axis] = (0, pad)
    return jnp.pad(x, widths)


# ----------------------------------------------------------------------------
# Tiled linear (+ optional GELU):  y = act(x @ W + b)
# grid = (M/tm, K/tk), full-N output block, f32 accumulator, bf16 I/O.
# ----------------------------------------------------------------------------
def _linear_kernel(x_ref, w_ref, b_ref, o_ref, acc_ref, *, activation):
    @pl.when(pl.program_id(1) == 0)
    def _():
        acc_ref[...] = jnp.zeros_like(acc_ref)

    acc_ref[...] += jnp.dot(x_ref[...], w_ref[...],
                            preferred_element_type=jnp.float32)

    @pl.when(pl.program_id(1) == pl.num_programs(1) - 1)
    def _():
        y = acc_ref[...] + b_ref[...]
        if activation == "gelu":
            y = jax.nn.gelu(y, approximate=True)
        o_ref[...] = y.astype(o_ref.dtype)


def linear(x, w, b, activation=None, tm=512, tk=1024):
    M, K = x.shape
    N = w.shape[1]
    tm, Mp = _tile(M, tm, 16)
    tk, Kp = _tile(K, tk, 128)
    xp = _pad_axis(_pad_axis(x, 0, Mp), 1, Kp)
    wp = _pad_axis(w, 0, Kp)
    kern = functools.partial(_linear_kernel, activation=activation)
    out = pl.pallas_call(
        kern,
        out_shape=jax.ShapeDtypeStruct((Mp, N), BF16),
        grid_spec=pltpu.PrefetchScalarGridSpec(
            num_scalar_prefetch=0,
            grid=(Mp // tm, Kp // tk),
            in_specs=[pl.BlockSpec((tm, tk), lambda i, k: (i, k)),
                      pl.BlockSpec((tk, N), lambda i, k: (k, 0)),
                      pl.BlockSpec((1, N), lambda i, k: (0, 0))],
            out_specs=pl.BlockSpec((tm, N), lambda i, k: (i, 0)),
            scratch_shapes=[pltpu.VMEM((tm, N), jnp.float32)]),
        compiler_params=pltpu.CompilerParams(
            dimension_semantics=("parallel", "arbitrary"),
            vmem_limit_bytes=VMEM_LIMIT),
    )(xp, wp, b)
    return out[:M] if Mp != M else out


# ----------------------------------------------------------------------------
# Fused linear + bias + residual-add + LayerNorm (post-LN transformer block).
# N (= hidden) is a full block so the LN row reduction is local; LN math f32.
# ----------------------------------------------------------------------------
def _linear_res_ln_kernel(x_ref, w_ref, b_ref, res_ref, g_ref, beta_ref,
                          o_ref, acc_ref):
    @pl.when(pl.program_id(1) == 0)
    def _():
        acc_ref[...] = jnp.zeros_like(acc_ref)

    acc_ref[...] += jnp.dot(x_ref[...], w_ref[...],
                            preferred_element_type=jnp.float32)

    @pl.when(pl.program_id(1) == pl.num_programs(1) - 1)
    def _():
        y = acc_ref[...] + b_ref[...] + res_ref[...].astype(jnp.float32)
        mu = jnp.mean(y, axis=-1, keepdims=True)
        var = jnp.mean((y - mu) ** 2, axis=-1, keepdims=True)
        o_ref[...] = ((y - mu) * jax.lax.rsqrt(var + 1e-12)
                      * g_ref[...] + beta_ref[...]).astype(o_ref.dtype)


def linear_res_ln(x, w, b, residual, gamma, beta, tm=512, tk=1024):
    M, K = x.shape
    N = w.shape[1]
    tm, Mp = _tile(M, tm, 16)
    tk, Kp = _tile(K, tk, 128)
    xp = _pad_axis(_pad_axis(x, 0, Mp), 1, Kp)
    wp = _pad_axis(w, 0, Kp)
    rp = _pad_axis(residual, 0, Mp)
    out = pl.pallas_call(
        _linear_res_ln_kernel,
        out_shape=jax.ShapeDtypeStruct((Mp, N), BF16),
        grid_spec=pltpu.PrefetchScalarGridSpec(
            num_scalar_prefetch=0,
            grid=(Mp // tm, Kp // tk),
            in_specs=[pl.BlockSpec((tm, tk), lambda i, k: (i, k)),
                      pl.BlockSpec((tk, N), lambda i, k: (k, 0)),
                      pl.BlockSpec((1, N), lambda i, k: (0, 0)),
                      pl.BlockSpec((tm, N), lambda i, k: (i, 0)),
                      pl.BlockSpec((1, N), lambda i, k: (0, 0)),
                      pl.BlockSpec((1, N), lambda i, k: (0, 0))],
            out_specs=pl.BlockSpec((tm, N), lambda i, k: (i, 0)),
            scratch_shapes=[pltpu.VMEM((tm, N), jnp.float32)]),
        compiler_params=pltpu.CompilerParams(
            dimension_semantics=("parallel", "arbitrary"),
            vmem_limit_bytes=VMEM_LIMIT),
    )(xp, wp, b, rp, gamma, beta)
    return out[:M] if Mp != M else out


# ----------------------------------------------------------------------------
# Standalone LayerNorm (embedding output only), tiled over rows, f32 math,
# bf16 output.
# ----------------------------------------------------------------------------
def _layernorm_kernel(x_ref, g_ref, b_ref, o_ref):
    x = x_ref[...].astype(jnp.float32)
    mu = jnp.mean(x, axis=-1, keepdims=True)
    var = jnp.mean((x - mu) ** 2, axis=-1, keepdims=True)
    o_ref[...] = ((x - mu) * jax.lax.rsqrt(var + 1e-12)
                  * g_ref[...] + b_ref[...]).astype(o_ref.dtype)


def layernorm(x, g, b, tm=1024):
    M, N = x.shape
    tm, Mp = _tile(M, tm, 8)
    xp = _pad_axis(x, 0, Mp)
    out = pl.pallas_call(
        _layernorm_kernel,
        out_shape=jax.ShapeDtypeStruct((Mp, N), BF16),
        grid_spec=pltpu.PrefetchScalarGridSpec(
            num_scalar_prefetch=0,
            grid=(Mp // tm,),
            in_specs=[pl.BlockSpec((tm, N), lambda i: (i, 0)),
                      pl.BlockSpec((1, N), lambda i: (0, 0)),
                      pl.BlockSpec((1, N), lambda i: (0, 0))],
            out_specs=pl.BlockSpec((tm, N), lambda i: (i, 0))),
        compiler_params=pltpu.CompilerParams(
            dimension_semantics=("parallel",),
            vmem_limit_bytes=VMEM_LIMIT),
    )(xp, g, b)
    return out[:M] if Mp != M else out


# ----------------------------------------------------------------------------
# Multi-head self-attention, one batch element per grid step, head-batched
# einsums (no per-head Python unroll, no lane concatenate).  1/sqrt(dh) is
# already folded into the Q projection; mask bias built in-kernel (f32);
# softmax math f32, MXU operands bf16.
# ----------------------------------------------------------------------------
def _attention_kernel(qkv_ref, mask_ref, o_ref, *, num_heads, hidden):
    qkv = qkv_ref[0]                                   # (S, 3H) bf16
    S = qkv.shape[0]
    dh = hidden // num_heads
    q = qkv[:, :hidden].reshape(S, num_heads, dh)
    k = qkv[:, hidden:2 * hidden].reshape(S, num_heads, dh)
    v = qkv[:, 2 * hidden:3 * hidden].reshape(S, num_heads, dh)

    bias = (1.0 - mask_ref[0]) * -1e9                  # (1, S) f32

    s = jnp.einsum('qnd,knd->nqk', q, k,
                   preferred_element_type=jnp.float32)  # (NH, S, S) f32
    s = s + bias[None, :, :]
    m = jnp.max(s, axis=-1, keepdims=True)
    p = jnp.exp(s - m)
    l = jnp.sum(p, axis=-1, keepdims=True)
    p = p * pl.reciprocal(l, approx=True)
    ctx = jnp.einsum('nqk,knd->qnd', p.astype(BF16), v,
                     preferred_element_type=jnp.float32)  # (S, NH, dh) f32
    o_ref[0] = ctx.reshape(S, hidden).astype(o_ref.dtype)


def attention(qkv, mask_f, num_heads):
    B, S, H3 = qkv.shape
    H = H3 // 3
    kern = functools.partial(_attention_kernel, num_heads=num_heads, hidden=H)
    return pl.pallas_call(
        kern,
        out_shape=jax.ShapeDtypeStruct((B, S, H), BF16),
        grid_spec=pltpu.PrefetchScalarGridSpec(
            num_scalar_prefetch=0,
            grid=(B,),
            in_specs=[pl.BlockSpec((1, S, H3), lambda b: (b, 0, 0)),
                      pl.BlockSpec((1, 1, S), lambda b: (b, 0, 0))],
            out_specs=pl.BlockSpec((1, S, H), lambda b: (b, 0, 0))),
        compiler_params=pltpu.CompilerParams(
            dimension_semantics=("parallel",),
            vmem_limit_bytes=VMEM_LIMIT),
    )(qkv, mask_f)


# ----------------------------------------------------------------------------
# Head, part 1: per-branch (Linear -> BatchNorm1d(train stats) -> ReLU).
# The orig/trans branches sit on a leading "parallel" grid axis (v7x megacore
# streams one branch per TensorCore); the big (flat_dim, E) bf16 weight is
# streamed over K with a (B, E) f32 accumulator; BN/ReLU run at the last K.
# ----------------------------------------------------------------------------
def _branch_head_kernel(x_ref, w_ref, b_ref, g_ref, beta_ref, o_ref, acc_ref):
    k = pl.program_id(1)

    @pl.when(k == 0)
    def _():
        acc_ref[...] = jnp.zeros_like(acc_ref)

    acc_ref[...] += jnp.dot(x_ref[0], w_ref[0],
                            preferred_element_type=jnp.float32)

    @pl.when(k == pl.num_programs(1) - 1)
    def _():
        z = acc_ref[...] + b_ref[0]
        mu = jnp.mean(z, axis=0, keepdims=True)
        var = jnp.mean((z - mu) ** 2, axis=0, keepdims=True)  # biased (BN train)
        zn = (z - mu) * jax.lax.rsqrt(var + 1e-5)
        o_ref[0] = jnp.maximum(zn * g_ref[0] + beta_ref[0], 0.0).astype(o_ref.dtype)


# Head, part 2: final Linear(2E, 1) over the (implicit) concatenation:
#   cat([oe, te], 1) @ Wf + bf == oe @ Wf[:E] + te @ Wf[E:] + bf
def _final_linear_kernel(enc_ref, fw_ref, fb_ref, y_ref):
    y = (jnp.dot(enc_ref[0], fw_ref[0], preferred_element_type=jnp.float32)
         + jnp.dot(enc_ref[1], fw_ref[1], preferred_element_type=jnp.float32)
         + fb_ref[...])
    y_ref[...] = y.astype(y_ref.dtype)


def head_forward(orig_flat, trans_flat, h):
    B, K = orig_flat.shape
    Kp, E = h["w"].shape[1], h["w"].shape[2]      # weight K already tile-padded
    tk = Kp if Kp <= HEAD_TK else HEAD_TK
    nk = Kp // tk

    flat = jnp.stack([orig_flat, trans_flat]).astype(BF16)   # (2, B, K)
    if Kp != K:
        flat = _pad_axis(flat, 2, Kp)

    if nk >= 3:
        w_spec = pl.BlockSpec((1, tk, E), lambda br, k: (br, k, 0),
                              pipeline_mode=pl.Buffered(3))
    else:
        w_spec = pl.BlockSpec((1, tk, E), lambda br, k: (br, k, 0))

    encoded = pl.pallas_call(
        _branch_head_kernel,
        out_shape=jax.ShapeDtypeStruct((2, B, E), F32),
        grid_spec=pltpu.PrefetchScalarGridSpec(
            num_scalar_prefetch=0,
            grid=(2, nk),
            in_specs=[pl.BlockSpec((1, B, tk), lambda br, k: (br, 0, k)),
                      w_spec,
                      pl.BlockSpec((1, 1, E), lambda br, k: (br, 0, 0)),
                      pl.BlockSpec((1, 1, E), lambda br, k: (br, 0, 0)),
                      pl.BlockSpec((1, 1, E), lambda br, k: (br, 0, 0))],
            out_specs=pl.BlockSpec((1, B, E), lambda br, k: (br, 0, 0)),
            scratch_shapes=[pltpu.VMEM((B, E), jnp.float32)]),
        compiler_params=pltpu.CompilerParams(
            dimension_semantics=("parallel", "arbitrary"),
            vmem_limit_bytes=VMEM_LIMIT),
    )(flat, h["w"], h["b"], h["g"], h["beta"])

    return pl.pallas_call(
        _final_linear_kernel,
        out_shape=jax.ShapeDtypeStruct((B, 1), F32),
        compiler_params=pltpu.CompilerParams(vmem_limit_bytes=VMEM_LIMIT),
    )(encoded, h["fw"], h["fb"])


# ----------------------------------------------------------------------------
# DistilBERT-style encoder (scaled down), post-LN, fused per-layer calls:
#   fused-QKV linear -> attention -> (proj + residual + LN)
#   -> GELU linear -> (w2 + residual + LN)
# ----------------------------------------------------------------------------
def distilbert_encoder(p, input_ids, attention_mask, cfg):
    B, S = input_ids.shape
    H, NH = cfg["hidden"], cfg["heads"]

    # embedding gather + position add are plain-JAX glue; LN is Pallas
    x = p["word_emb"][input_ids] + p["pos_emb"][:S][None, :, :]
    x = layernorm(x.reshape(B * S, H), p["emb_ln_g"], p["emb_ln_b"])   # bf16

    mask_f = attention_mask.astype(F32).reshape(B, 1, S)

    for layer in p["layers"]:
        qkv = linear(x, layer["wqkv"], layer["bqkv"])             # (B*S, 3H) bf16
        ctx = attention(qkv.reshape(B, S, 3 * H), mask_f, NH)     # (B, S, H) bf16
        x = linear_res_ln(ctx.reshape(B * S, H), layer["wo"], layer["bo"],
                          x, layer["ln1_g"], layer["ln1_b"])
        hdn = linear(x, layer["w1"], layer["b1"], activation="gelu")
        x = linear_res_ln(hdn, layer["w2"], layer["b2"],
                          x, layer["ln2_g"], layer["ln2_b"])

    return x.reshape(B, S, H)   # last_hidden_state (bf16)


# ----------------------------------------------------------------------------
# Full ContrastiveModel forward
# ----------------------------------------------------------------------------
def contrastive_forward(params, original_input_ids, original_attention_mask,
                        translation_input_ids, translation_attention_mask, cfg):
    orig_hidden = distilbert_encoder(params["orig_bert"], original_input_ids,
                                     original_attention_mask, cfg)
    trans_hidden = distilbert_encoder(params["trans_bert"], translation_input_ids,
                                      translation_attention_mask, cfg)

    B = original_input_ids.shape[0]
    orig_flat = orig_hidden.reshape(B, -1)     # torch.flatten(..., start_dim=1)
    trans_flat = trans_hidden.reshape(B, -1)
    return head_forward(orig_flat, trans_flat, params["head"])   # (B, 1) f32


# ----------------------------------------------------------------------------
# Deterministic parameter init (bf16 matmul weights, f32 bias/LN/BN params,
# attention scale folded into the Q projection).
# ----------------------------------------------------------------------------
def _init_bert(key, cfg):
    H, FFN, NH = cfg["hidden"], cfg["ffn"], cfg["heads"]
    dh = H // NH
    scale = 1.0 / (dh ** 0.5)
    keys = iter(jax.random.split(key, 4 + 8 * cfg["layers"]))
    p = {
        "word_emb": jax.random.normal(next(keys), (cfg["vocab"], H), F32) * 0.02,
        "pos_emb": jax.random.normal(next(keys), (cfg["max_pos"], H), F32) * 0.02,
        "emb_ln_g": jnp.ones((1, H), F32),
        "emb_ln_b": jnp.zeros((1, H), F32),
        "layers": [],
    }
    for _ in range(cfg["layers"]):
        wqkv = jax.random.normal(next(keys), (H, 3 * H), F32) * 0.02
        bqkv = jnp.zeros((1, 3 * H), F32)
        # fold 1/sqrt(dh) into the Q slice of the fused QKV projection
        wqkv = wqkv.at[:, :H].multiply(scale)
        bqkv = bqkv.at[:, :H].multiply(scale)
        layer = {
            "wqkv": wqkv.astype(BF16), "bqkv": bqkv,
            "wo": (jax.random.normal(next(keys), (H, H), F32) * 0.02).astype(BF16),
            "bo": jnp.zeros((1, H), F32),
            "ln1_g": jnp.ones((1, H), F32), "ln1_b": jnp.zeros((1, H), F32),
            "w1": (jax.random.normal(next(keys), (H, FFN), F32) * 0.02).astype(BF16),
            "b1": jnp.zeros((1, FFN), F32),
            "w2": (jax.random.normal(next(keys), (FFN, H), F32) * 0.02).astype(BF16),
            "b2": jnp.zeros((1, H), F32),
            "ln2_g": jnp.ones((1, H), F32), "ln2_b": jnp.zeros((1, H), F32),
        }
        p["layers"].append(layer)
    return p


def init_params(key, cfg):
    k_o, k_t, k1, k2, k3, k4 = jax.random.split(key, 6)
    flat_dim = cfg["seq"] * cfg["hidden"]      # mimics 201 * 768
    enc = cfg["encode"]                        # mimics 256
    # Pad the head weight's streamed K axis to the tile at init time (zero rows
    # are exact) so no per-call weight padding is needed at real scale.
    if flat_dim <= HEAD_TK:
        Kp = flat_dim
    else:
        Kp = ((flat_dim + HEAD_TK - 1) // HEAD_TK) * HEAD_TK

    def head_w(k):
        w = jax.random.normal(k, (flat_dim, enc), F32) * 0.02
        if Kp != flat_dim:
            w = jnp.pad(w, ((0, Kp - flat_dim), (0, 0)))
        return w.astype(BF16)

    head = {
        "w": jnp.stack([head_w(k1), head_w(k2)]),          # (2, Kp, E) bf16
        "b": jnp.zeros((2, 1, enc), F32),
        "g": jnp.ones((2, 1, enc), F32),
        "beta": jnp.zeros((2, 1, enc), F32),
        # final Linear(2*enc, 1), stored pre-split for the concat-free matmul
        "fw": jnp.stack([jax.random.normal(k3, (enc, 1), F32) * 0.02,
                         jax.random.normal(k4, (enc, 1), F32) * 0.02]),  # (2,E,1)
        "fb": jnp.zeros((1, 1), F32),
    }
    return {
        "orig_bert": _init_bert(k_o, cfg),
        "trans_bert": _init_bert(k_t, cfg),
        "head": head,
    }


# ----------------------------------------------------------------------------
if __name__ == "__main__":
    cfg = dict(vocab=100, max_pos=16, seq=8, hidden=32, heads=4, ffn=64,
               layers=2, encode=64)
    B, S = 2, cfg["seq"]

    key = jax.random.PRNGKey(0)
    k_params, k_ids_o, k_ids_t = jax.random.split(key, 3)
    params = init_params(k_params, cfg)

    original_input_ids = jax.random.randint(k_ids_o, (B, S), 0, cfg["vocab"], jnp.int32)
    translation_input_ids = jax.random.randint(k_ids_t, (B, S), 0, cfg["vocab"], jnp.int32)
    original_attention_mask = jnp.array([[1] * S, [1] * (S - 1) + [0]], jnp.int32)
    translation_attention_mask = jnp.array([[1] * (S - 2) + [0, 0], [1] * S], jnp.int32)

    y_pred = contrastive_forward(params, original_input_ids, original_attention_mask,
                                 translation_input_ids, translation_attention_mask, cfg)
    y_pred = jax.block_until_ready(y_pred)
    assert y_pred.shape == (B, 1) and y_pred.dtype == jnp.float32
    print("KERNEL_OK")
</pallas_src>

<mosaic_0001>
module attributes {stable_mosaic.version = 11 : i64} {
  func.func @_layernorm_kernel(%arg0: i32, %arg1: memref<16x32xf32, #tpu.memory_space<vmem>>, %arg2: memref<1x32xf32, #tpu.memory_space<vmem>>, %arg3: memref<1x32xf32, #tpu.memory_space<vmem>>, %arg4: memref<16x32xbf16, #tpu.memory_space<vmem>>) attributes {dimension_semantics = [#tpu.dimension_semantics<parallel>], iteration_bounds = array<i64: 1>, scalar_prefetch = 0 : i64, scratch_operands = 0 : i64, tpu.core_type = #tpu.core_type<tc>, window_params = [{transform_indices = @transform_0, window_bounds = array<i64: 16, 32>}, {pipeline_mode = #tpu.pipeline_mode<synchronous>, transform_indices = @transform_1, window_bounds = array<i64: 1, 32>}, {pipeline_mode = #tpu.pipeline_mode<synchronous>, transform_indices = @transform_2, window_bounds = array<i64: 1, 32>}, {transform_indices = @transform_3, window_bounds = array<i64: 16, 32>}]} {
    %c0 = arith.constant 0 : index
    %c0_0 = arith.constant 0 : index
    %0 = vector.load %arg1[%c0, %c0_0] : memref<16x32xf32, #tpu.memory_space<vmem>>, vector<16x32xf32>
    %cst = arith.constant dense<0.000000e+00> : vector<16xf32>
    %1 = vector.multi_reduction <add>, %0, %cst [1] : vector<16x32xf32> to vector<16xf32>
    %2 = vector.shape_cast %1 : vector<16xf32> to vector<16x1xf32>
    %cst_1 = arith.constant 3.200000e+01 : f32
    %3 = vector.broadcast %cst_1 : f32 to vector<16x1xf32>
    %4 = arith.divf %2, %3 : vector<16x1xf32>
    %5 = vector.broadcast %4 : vector<16x1xf32> to vector<16x32xf32>
    %6 = arith.subf %0, %5 : vector<16x32xf32>
    %7 = arith.mulf %6, %6 : vector<16x32xf32>
    %cst_2 = arith.constant dense<0.000000e+00> : vector<16xf32>
    %8 = vector.multi_reduction <add>, %7, %cst_2 [1] : vector<16x32xf32> to vector<16xf32>
    %9 = vector.shape_cast %8 : vector<16xf32> to vector<16x1xf32>
    %cst_3 = arith.constant 3.200000e+01 : f32
    %10 = vector.broadcast %cst_3 : f32 to vector<16x1xf32>
    %11 = arith.divf %9, %10 : vector<16x1xf32>
    %12 = vector.broadcast %4 : vector<16x1xf32> to vector<16x32xf32>
    %13 = arith.subf %0, %12 : vector<16x32xf32>
    %cst_4 = arith.constant 9.99999996E-13 : f32
    %14 = vector.broadcast %cst_4 : f32 to vector<16x1xf32>
    %15 = arith.addf %11, %14 : vector<16x1xf32>
    %16 = math.rsqrt %15 : vector<16x1xf32>
    %17 = vector.broadcast %16 : vector<16x1xf32> to vector<16x32xf32>
    %18 = arith.mulf %13, %17 : vector<16x32xf32>
    %c0_5 = arith.constant 0 : index
    %c0_6 = arith.constant 0 : index
    %19 = vector.load %arg2[%c0_5, %c0_6] : memref<1x32xf32, #tpu.memory_space<vmem>>, vector<1x32xf32>
    %20 = vector.broadcast %19 : vector<1x32xf32> to vector<16x32xf32>
    %21 = arith.mulf %18, %20 : vector<16x32xf32>
    %c0_7 = arith.constant 0 : index
    %c0_8 = arith.constant 0 : index
    %22 = vector.load %arg3[%c0_7, %c0_8] : memref<1x32xf32, #tpu.memory_space<vmem>>, vector<1x32xf32>
    %23 = vector.broadcast %22 : vector<1x32xf32> to vector<16x32xf32>
    %24 = arith.addf %21, %23 : vector<16x32xf32>
    %25 = arith.truncf %24 : vector<16x32xf32> to vector<16x32xbf16>
    %c0_9 = arith.constant 0 : index
    %c0_10 = arith.constant 0 : index
    %26 = vector.load %arg4[%c0_9, %c0_10] : memref<16x32xbf16, #tpu.memory_space<vmem>>, vector<16x32xbf16>
    tpu.vector_store %arg4[%c0_9, %c0_10], %25 {strides = array<i32>} : memref<16x32xbf16, #tpu.memory_space<vmem>>, vector<16x32xbf16>,
    return
  }
  func.func @transform_0(%arg0: i32) -> (i32, i32) {
    %c0_i32 = arith.constant 0 : i32
    %c0_i32_0 = arith.constant 0 : i32
    return %arg0, %c0_i32 : i32, i32
  }
  func.func @transform_1(%arg0: i32) -> (i32, i32) {
    %c0_i32 = arith.constant 0 : i32
    %c0_i32_0 = arith.constant 0 : i32
    %c0_i32_1 = arith.constant 0 : i32
    return %c0_i32, %c0_i32_0 : i32, i32
  }
  func.func @transform_2(%arg0: i32) -> (i32, i32) {
    %c0_i32 = arith.constant 0 : i32
    %c0_i32_0 = arith.constant 0 : i32
    %c0_i32_1 = arith.constant 0 : i32
    return %c0_i32, %c0_i32_0 : i32, i32
  }
  func.func @transform_3(%arg0: i32) -> (i32, i32) {
    %c0_i32 = arith.constant 0 : i32
    %c0_i32_0 = arith.constant 0 : i32
    return %arg0, %c0_i32 : i32, i32
  }
}

</mosaic_0001>

<bundles_post_ra>
// kernel: tpu_custom_call.1
= control target key start
LH: loop header
LB: loop body
LE: loop exit
PB: predicated region body
PF: predicated region fallthrough
CT: control target
= control target key end

     0   :  { %8 = vsyncpa [#allocation3], 0  ;;  %s207_s0 = inlined_call_operand.hbm [shape: f32[16,32], index: 0, kind: input, shape index: {}]   ;;  %s208_s1 = inlined_call_operand.vmem [shape: f32[1,32], index: 1, kind: input, shape index: {}]   ;;  %s209_s2 = inlined_call_operand.vmem [shape: f32[1,32], index: 2, kind: input, shape index: {}]   ;;  %s210_s3 = inlined_call_operand.hbm [shape: bf16[16,32], index: 3, kind: output, shape index: {}]  }
   0x1   :  { %9 = vsyncpa [#allocation4], 0  ;;  %s165_s12 = smov [#allocation2]  }
   0x2   :  { %s15_s13 = sshll.u32 %s165_s12, 4  ;;  %s16_s13 = int_to_ptr.vmem [resolvable:$true] %s15_s13 }
   0x3   :  { %s129_s14 = scalar_lea.vmem %s16_s13, 256  ;;  %p134_p1 = scmp.lt.s32.totalorder %s16_s13, %s16_s13 }
   0x4   :  { %p130_p0 = scmp.ne.s32.totalorder %s16_s13, %s129_s14  ;;  %p135_p2 = scmp.lt.s32.totalorder %s129_s14, %s129_s14 }
   0x6   :  { %p136_p3 = por %p135_p2, %p134_p1 }
   0x8   :  { %p137_p4 = pnand %p136_p3, %p130_p0 }
   0xa   :  { %140 = shalt.err (!%p137_p4)
}
   0xb   :  { %s166_s15 = smov 128   ;;  %s167_s16 = smov 8  }
   0xc   :  { %21 = dma.hbm_to_vmem [thread:$0]  %s207_s0, 256, %s16_s13, [#allocation3], %s166_s15, %s166_s15, %s167_s16  }
   0xd   :  { %161 = dma.done.wait [#allocation3], 256  }
   0xe   :  { %162 = vsyncadd [#allocation3], 4294967040  ;;  %vm31_vm0 = vcmask 261120   ;;  %v29_v0 = vld [vmem:[#allocation2] sm:$0xff]  ;;  %v30_v1 = vld [vmem:[#allocation2 + $0x8] sm:$0xff]  ;;  %vm85_vm1 = vcmask 257024  }
   0xf   :  { %v32_v2 = vsel %vm31_vm0, %v29_v0, 0.0  ;;  %v35_v3 = vsel %vm31_vm0, %v30_v1, 0.0  ;;  %v105_v21 = vld [vmem:[%s208_s1] ss:$0 sm:$0xff]  ;;  %s168_s22 = smov [#allocation5]  }
  0x10   :  { %33 = vadd.xlane.f32.xlu0 %v32_v2  ;;  %v106_v23 = vld [vmem:[%s209_s2] ss:$0 sm:$0xff]  ;;  %s93_s23 = sshll.u32 %s168_s22, 4  ;;  %s94_s23 = int_to_ptr.vmem [resolvable:$true] %s93_s23 }
  0x11   :  { %s141_s1 = scalar_lea.vmem %s94_s23, 128  ;;  %p146_p6 = scmp.lt.s32.totalorder %s94_s23, %s94_s23 }
  0x12   :  { %p142_p5 = scmp.ne.s32.totalorder %s94_s23, %s141_s1  ;;  %p147_p7 = scmp.lt.s32.totalorder %s141_s1, %s141_s1 }
  0x14   :  { %36 = vadd.xlane.f32.xlu0 %v35_v3  ;;  %p148_p8 = por %p147_p7, %p146_p6 }
  0x16   :  { %p149_p9 = pnand %p148_p8, %p142_p5 }
  0x99   :  { %v34_v4 = vpop.xlane.xlu0 %33 }
  0x9a   :  { %v39_v5 = vmul.f32 0.03125, %v34_v4 }
  0x9c   :  { %v41_v6 = vsub.f32 %v29_v0, %v39_v5 }
  0x9d   :  { %v37_v7 = vpop.xlane.xlu0 %36 }
  0x9e   :  { %v40_v8 = vmul.f32 0.03125, %v37_v7  ;;  %v43_v9 = vmul.f32 %v41_v6, %v41_v6 }
  0xa0   :  { %v42_v10 = vsub.f32 %v30_v1, %v40_v8  ;;  %v45_v11 = vsel %vm31_vm0, %v43_v9, 0.0 }
  0xa1   :  { %46 = vadd.xlane.f32.xlu1 %v45_v11 }
  0xa2   :  { %v44_v12 = vmul.f32 %v42_v10, %v42_v10 }
  0xa4   :  { %v48_v13 = vsel %vm31_vm0, %v44_v12, 0.0 }
  0xa5   :  { %49 = vadd.xlane.f32.xlu1 %v48_v13 }
 0x12a   :  { %v47_v14 = vpop.xlane.xlu1 %46 }
 0x12b   :  { %v51_v15 = vmul.f32 0.03125, %v47_v14 }
 0x12d   :  { %v53_v16 = vadd.f32 1e-12, %v51_v15 }
 0x12e   :  { %v50_v17 = vpop.xlane.xlu1 %49 }
 0x12f   :  { %117 = vrsqrt.f32 %v53_v16  ;;  %v52_v18 = vmul.f32 0.03125, %v50_v17 }
 0x131   :  { %v54_v19 = vadd.f32 1e-12, %v52_v18 }
 0x133   :  { %119 = vrsqrt.f32 %v54_v19 }
 0x13c   :  { %v118_v20 = vpop.eup %117 }
 0x13d   :  { %v57_v22 = vmul.f32 %v118_v20, %v41_v6 }
 0x13f   :  { %v66_v24 = vmul.f32 %v105_v21, %v57_v22 }
 0x140   :  { %v120_v25 = vpop.eup %119 }
 0x141   :  { %v58_v26 = vmul.f32 %v120_v25, %v42_v10  ;;  %v75_v27 = vadd.f32 %v106_v23, %v66_v24 }
 0x143   :  { %v67_v28 = vmul.f32 %v105_v21, %v58_v26  ;;  %v109_v29 = vpack.c.bf16 %v75_v27, %v75_v27 }
 0x145   :  { %v76_v30 = vadd.f32 %v106_v23, %v67_v28  ;;  %86 = vst.msk [vmem:[#allocation5] sm:$0xf] %vm85_vm1, %v109_v29 }
 0x147   :  { %v110_v31 = vpack.c.bf16 %v76_v30, %v76_v30 }
 0x149   :  { %87 = vst.msk [vmem:[#allocation5 + $0x4] sm:$0xf] %vm85_vm1, %v110_v31 }
 0x14a   :  { %152 = shalt.err (!%p149_p9)
}
 0x14b   :  { %s169_s2 = smov 64   ;;  %s170_s24 = smov 4  }
 0x14c   :  { %99 = dma.vmem_to_hbm [thread:$0]  %s94_s23, 128, %s210_s3, [#allocation4], %s169_s2, %s169_s2, %s170_s24  }
 0x14d   :  { %163 = dma.done.wait [#allocation4], 128  }
 0x14e   :  { %164 = vsyncadd [#allocation4], 4294967168 }
 0x14f   :  { %103 = vsyncpa [#allocation3], 1 }
 0x150   :  { %104 = vsyncpa [#allocation4], 1 }

</bundles_post_ra>
